<compile_context>
chip_gen: v5e
topology: v5e:2x2
jax: 0.10.0
libtpu: 0.0.40
codegen_flags: <defaults>
</compile_context>

<pallas_src>
import jax
import jax.numpy as jnp
from jax.experimental import pallas as pl
from jax.experimental.pallas import tpu as pltpu


def _round_up(x: int, m: int) -> int:
    return ((x + m - 1) // m) * m


def _pick_lane_tile(dim: int, cap: int) -> int:
    """`dim` is a multiple of 128. Largest tile <= cap (multiple of 128) that
    divides dim, or the whole dim if it already fits under the cap."""
    if dim <= cap:
        return dim
    for t in range(cap, 127, -128):
        if dim % t == 0:
            return t
    return 128  # unreachable for dim % 128 == 0


def _approx_gelu(y):
    # approximate GELU: y * sigmoid(1.702 * y)  (sigmoid lowers to EUP)
    return y * jax.nn.sigmoid(1.702 * y)


# ---------------------------------------------------------------------------
# Kernels
# ---------------------------------------------------------------------------
def _proj_gelu_single_k_kernel(x_ref, w_ref, b_ref, o_ref):
    """K fits in a single tile: no scratch accumulator, no pl.when branches."""
    y = jnp.dot(x_ref[...], w_ref[...], preferred_element_type=jnp.float32)
    y = y + b_ref[...].astype(jnp.float32)
    o_ref[...] = _approx_gelu(y).astype(o_ref.dtype)


def _proj_gelu_multi_k_kernel(x_ref, w_ref, b_ref, o_ref, acc_ref):
    """K split over the innermost grid axis: f32 VMEM accumulator + epilogue."""
    k = pl.program_id(2)

    @pl.when(k == 0)
    def _():
        acc_ref[...] = jnp.zeros_like(acc_ref)

    acc_ref[...] += jnp.dot(
        x_ref[...], w_ref[...], preferred_element_type=jnp.float32
    )

    @pl.when(k == pl.num_programs(2) - 1)
    def _():
        y = acc_ref[...] + b_ref[...].astype(jnp.float32)
        o_ref[...] = _approx_gelu(y).astype(o_ref.dtype)


# ---------------------------------------------------------------------------
# One-time parameter preparation (hoisted out of the hot path)
# ---------------------------------------------------------------------------
def prepare_params(weight, bias, *, compute_dtype=None):
    """Transpose the torch-convention (dim_out, dim_in) weight to
    (dim_in, dim_out), pad K/N up to multiples of 128, and optionally cast to a
    narrower MXU dtype (e.g. bf16).  Run ONCE per set of weights."""
    dim_out, dim_in = weight.shape
    kp = _round_up(dim_in, 128)
    np_ = _round_up(dim_out, 128)

    w_t = weight.T
    if (kp, np_) != (dim_in, dim_out):
        w_t = jnp.pad(w_t, ((0, kp - dim_in), (0, np_ - dim_out)))
    b2d = bias.reshape(1, dim_out)
    if np_ != dim_out:
        b2d = jnp.pad(b2d, ((0, 0), (0, np_ - dim_out)))

    if compute_dtype is not None:
        w_t = w_t.astype(compute_dtype)
    # Bias stays f32: it is added to the f32 accumulator in the epilogue.
    b2d = b2d.astype(jnp.float32)
    return w_t, b2d, dim_out


# ---------------------------------------------------------------------------
# Hot-path wrapper
# ---------------------------------------------------------------------------
def approximate_gelu(x, w_t, b2d, dim_out, *, out_dtype=None):
    """Fused Linear + approximate GELU:  y = x @ w_t + b;  out = y*sigmoid(1.702*y).

    x    : (..., dim_in)
    w_t  : (kp, np_)  pre-transposed, pre-padded weight from prepare_params
    b2d  : (1, np_)   pre-padded f32 bias
    """
    *lead, dim_in = x.shape
    kp, np_ = w_t.shape
    out_dtype = out_dtype or x.dtype

    m = 1
    for d in lead:
        m *= d
    x2d = x.reshape(m, dim_in)
    if x2d.dtype != w_t.dtype:
        x2d = x2d.astype(w_t.dtype)          # e.g. bf16 MXU operands
    if kp != dim_in:                          # only x is padded per call
        x2d = jnp.pad(x2d, ((0, 0), (0, kp - dim_in)))

    # ------------------------------------------------------------------
    # Small-problem fast path: whole operands fit comfortably in VMEM.
    # Single block, no grid, no scratch, no per-step pipeline overhead.
    # ------------------------------------------------------------------
    if m <= 512 and kp <= 1024 and np_ <= 512:
        out2d = pl.pallas_call(
            _proj_gelu_single_k_kernel,
            out_shape=jax.ShapeDtypeStruct((m, np_), out_dtype),
            in_specs=[pl.BlockSpec(memory_space=pltpu.MemorySpace.VMEM)] * 3,
            out_specs=pl.BlockSpec(memory_space=pltpu.MemorySpace.VMEM),
        )(x2d, w_t, b2d)
        if np_ != dim_out:
            out2d = out2d[:, :dim_out]
        return out2d.reshape(*lead, dim_out)

    # ------------------------------------------------------------------
    # Tiled path: 3-D grid (M, N, K), K innermost.
    # ------------------------------------------------------------------
    # M tile: choose from {128,256,512} minimizing pad waste (prefer larger).
    if m < 128:
        tm = _round_up(m, 8)
    else:
        tm = min((128, 256, 512), key=lambda t: (_round_up(m, t), -t))
    mp = _round_up(m, tm)

    # K/N tiles must divide the pre-padded weight dims (no per-call W pad).
    tk = _pick_lane_tile(kp, 1024)   # grow K tile first: fewer accumulator passes
    tn = _pick_lane_tile(np_, 512)   # keep out/acc tiles modest (v7x: 64 MiB VMEM)

    # v7x has 2 TensorCores; ensure a parallel axis has >= 2 blocks when possible.
    if mp // tm == 1 and np_ // tn == 1 and np_ % 256 == 0:
        tn = np_ // 2

    if mp != m:
        x2d = jnp.pad(x2d, ((0, mp - m), (0, 0)))

    grid_m, grid_n, grid_k = mp // tm, np_ // tn, kp // tk
    grid = (grid_m, grid_n, grid_k)

    x_bytes = x2d.dtype.itemsize
    w_bytes = w_t.dtype.itemsize
    o_bytes = jnp.dtype(out_dtype).itemsize
    cost = pl.CostEstimate(
        flops=2 * mp * kp * np_,
        transcendentals=mp * np_,
        # Account for grid re-reads: x re-read per N tile, W re-read per M tile.
        bytes_accessed=(mp * kp * x_bytes * grid_n
                        + kp * np_ * w_bytes * grid_m
                        + np_ * 4 * grid_m
                        + mp * np_ * o_bytes),
    )

    if grid_k == 1:
        kernel = _proj_gelu_single_k_kernel
        scratch = []
    else:
        kernel = _proj_gelu_multi_k_kernel
        scratch = [pltpu.VMEM((tm, tn), jnp.float32)]

    out2d = pl.pallas_call(
        kernel,
        out_shape=jax.ShapeDtypeStruct((mp, np_), out_dtype),
        grid_spec=pltpu.PrefetchScalarGridSpec(
            num_scalar_prefetch=0,
            grid=grid,
            in_specs=[
                pl.BlockSpec((tm, tk), lambda i, j, k: (i, k)),   # x tile
                # Optional knob (sweep only if a profile shows exposed W DMA):
                # pipeline_mode=pl.Buffered(3) on the W spec.
                pl.BlockSpec((tk, tn), lambda i, j, k: (k, j)),   # W tile
                pl.BlockSpec((1, tn), lambda i, j, k: (0, j)),    # bias tile
            ],
            out_specs=pl.BlockSpec((tm, tn), lambda i, j, k: (i, j)),
            scratch_shapes=scratch,
        ),
        compiler_params=pltpu.CompilerParams(
            dimension_semantics=("parallel", "parallel", "arbitrary"),
        ),
        cost_estimate=cost,
    )(x2d, w_t, b2d)

    if (mp, np_) != (m, dim_out):
        out2d = out2d[:m, :dim_out]
    return out2d.reshape(*lead, dim_out)


def _reference(x, weight, bias):
    y = jnp.einsum("...i,oi->...o", x, weight) + bias
    return y * jax.nn.sigmoid(1.702 * y)


if __name__ == "__main__":
    key = jax.random.PRNGKey(0)
    kx, kw, kb, kx2, kw2, kb2 = jax.random.split(key, 6)

    # ---- Config matching the module: ApproximateGELU(dim_in=32, dim_out=32) ----
    dim_in, dim_out = 32, 32
    batch, seq = 2, 8

    x = jax.random.normal(kx, (batch, seq, dim_in), dtype=jnp.float32)
    bound = 1.0 / (dim_in ** 0.5)
    weight = jax.random.uniform(kw, (dim_out, dim_in), jnp.float32, -bound, bound)
    bias = jax.random.uniform(kb, (dim_out,), jnp.float32, -bound, bound)

    # One-time parameter prep (transpose + pad), hoisted off the hot path.
    w_t, b2d, n_out = prepare_params(weight, bias)

    out = approximate_gelu(x, w_t, b2d, n_out)       # single-block fast path
    jax.block_until_ready(out)

    ref = _reference(x, weight, bias)
    assert out.shape == (batch, seq, dim_out)
    assert jnp.allclose(out, ref, atol=1e-5, rtol=1e-5)

    # ---- Larger config exercising the tiled / accumulator path with bf16 MXU
    #      operands and f32 accumulation ----
    dim_in2, dim_out2, m2 = 1536, 256, 768
    x2 = jax.random.normal(kx2, (m2, dim_in2), dtype=jnp.float32)
    bound2 = 1.0 / (dim_in2 ** 0.5)
    weight2 = jax.random.uniform(kw2, (dim_out2, dim_in2), jnp.float32, -bound2, bound2)
    bias2 = jax.random.uniform(kb2, (dim_out2,), jnp.float32, -bound2, bound2)

    w_t2, b2d2, n_out2 = prepare_params(weight2, bias2, compute_dtype=jnp.bfloat16)
    out2 = approximate_gelu(x2, w_t2, b2d2, n_out2, out_dtype=jnp.float32)
    jax.block_until_ready(out2)

    ref2 = _reference(x2, weight2, bias2)
    assert out2.shape == (m2, dim_out2)
    # bf16 operands / f32 accumulation: loosened tolerance vs. the f32 reference.
    assert float(jnp.max(jnp.abs(out2 - ref2))) < 1e-1

    print("KERNEL_OK")
</pallas_src>

<mosaic_0001>
module attributes {stable_mosaic.version = 11 : i64} {
  func.func @_proj_gelu_single_k_kernel(%arg0: memref<16x128xf32, #tpu.memory_space<vmem>>, %arg1: memref<128x128xf32, #tpu.memory_space<vmem>>, %arg2: memref<1x128xf32, #tpu.memory_space<vmem>>, %arg3: memref<16x128xf32, #tpu.memory_space<vmem>>) attributes {dimension_semantics = [], scalar_prefetch = 0 : i64, scratch_operands = 0 : i64, tpu.core_type = #tpu.core_type<tc>} {
    %c0 = arith.constant 0 : index
    %c0_0 = arith.constant 0 : index
    %0 = vector.load %arg0[%c0, %c0_0] : memref<16x128xf32, #tpu.memory_space<vmem>>, vector<16x128xf32>
    %c0_1 = arith.constant 0 : index
    %c0_2 = arith.constant 0 : index
    %1 = vector.load %arg1[%c0_1, %c0_2] : memref<128x128xf32, #tpu.memory_space<vmem>>, vector<128x128xf32>
    %cst = arith.constant dense<0.000000e+00> : vector<16x128xf32>
    %2 = tpu.matmul %0, %1, %cst {dimension_numbers = #tpu.dot_dimension_numbers<[1], [0], [0], [1], [0, 0, 1, 1], [], []>} : vector<16x128xf32>, vector<128x128xf32>, vector<16x128xf32> -> vector<16x128xf32>
    %c0_3 = arith.constant 0 : index
    %c0_4 = arith.constant 0 : index
    %3 = vector.load %arg2[%c0_3, %c0_4] : memref<1x128xf32, #tpu.memory_space<vmem>>, vector<1x128xf32>
    %4 = vector.broadcast %3 : vector<1x128xf32> to vector<16x128xf32>
    %5 = arith.addf %2, %4 : vector<16x128xf32>
    %cst_5 = arith.constant 1.702000e+00 : f32
    %6 = vector.broadcast %cst_5 : f32 to vector<16x128xf32>
    %7 = arith.mulf %6, %5 : vector<16x128xf32>
    %8 = arith.negf %7 : vector<16x128xf32>
    %9 = math.exp %8 : vector<16x128xf32>
    %cst_6 = arith.constant 1.000000e+00 : f32
    %10 = vector.broadcast %cst_6 : f32 to vector<16x128xf32>
    %11 = arith.addf %10, %9 : vector<16x128xf32>
    %12 = arith.divf %10, %11 : vector<16x128xf32>
    %13 = arith.mulf %5, %12 : vector<16x128xf32>
    %c0_7 = arith.constant 0 : index
    %c0_8 = arith.constant 0 : index
    %14 = vector.load %arg3[%c0_7, %c0_8] : memref<16x128xf32, #tpu.memory_space<vmem>>, vector<16x128xf32>
    tpu.vector_store %arg3[%c0_7, %c0_8], %13 {strides = array<i32>} : memref<16x128xf32, #tpu.memory_space<vmem>>, vector<16x128xf32>,
    return
  }
}

</mosaic_0001>

<bundles_post_ra>
// kernel: tpu_custom_call.1
= control target key start
LH: loop header
LB: loop body
LE: loop exit
PB: predicated region body
PF: predicated region fallthrough
CT: control target
= control target key end

     0   :  { %8 = vsyncpa [#allocation3], 0  ;;  %s312_s0 = inlined_call_operand.hbm [shape: f32[16,128], index: 0, kind: input, shape index: {}]   ;;  %s313_s1 = inlined_call_operand.hbm [shape: f32[128,128], index: 1, kind: input, shape index: {}]   ;;  %s314_s2 = inlined_call_operand.vmem [shape: f32[1,128], index: 2, kind: input, shape index: {}]   ;;  %s315_s3 = inlined_call_operand.hbm [shape: f32[16,128], index: 3, kind: output, shape index: {}]  }
   0x1   :  { %9 = vsyncpa [#allocation6], 0 }
   0x2   :  { %10 = vsyncpa [#allocation4], 0  ;;  %s15_s14 = sshll.u32 %s312_s0, 4  ;;  %s266_s15 = smov [#allocation2]   ;;  %s16_s14 = int_to_ptr.hbm [resolvable:$true] %s15_s14 }
   0x3   :  { %s17_s16 = sshll.u32 %s266_s15, 4  ;;  %s28_s19 = sshll.u32 %s313_s1, 4  ;;  %s18_s16 = int_to_ptr.vmem [resolvable:$true] %s17_s16  ;;  %s29_s19 = int_to_ptr.hbm [resolvable:$true] %s28_s19 }
   0x4   :  { %s267_s20 = smov 128   ;;  %s268_s21 = smov 8  }
   0x5   :  { %23 = dma.hbm_to_vmem [thread:$0]  %s16_s14, 256, %s18_s16, [#allocation3], %s267_s20, %s267_s20, %s268_s21  }
   0x6   :  { %s269_s22 = smov [#allocation5]  }
   0x7   :  { %s30_s23 = sshll.u32 %s269_s22, 4  ;;  %s31_s23 = int_to_ptr.vmem [resolvable:$true] %s30_s23 }
   0x8   :  { %36 = dma.hbm_to_vmem [thread:$0]  %s29_s19, 2048, %s31_s23, [#allocation6], %s267_s20, %s267_s20, %s268_s21  }
   0x9   :  { %260 = dma.done.wait [#allocation3], 256  }
   0xa   :  { %261 = vsyncadd [#allocation3], 4294967040 }
   0xb   :  { %262 = dma.done.wait [#allocation6], 2048  }
   0xc   :  { %263 = vsyncadd [#allocation6], 4294965248  ;;  %v64_v0 = vld [vmem:[#allocation5 + $0x78] sm:$0xff]  ;;  %v63_v1 = vld [vmem:[#allocation5 + $0x70] sm:$0xff]  ;;  %s142_s27 = sshll.u32 %s315_s3, 4  ;;  %s143_s27 = int_to_ptr.hbm [resolvable:$true] %s142_s27 }
   0xd   :  { %69 = vmatpush.msra.mxu0 %v64_v0  ;;  %158 = vmatpush.msra.mxu1 %v64_v0  ;;  %v62_v2 = vld [vmem:[#allocation5 + $0x68] sm:$0xff]  ;;  %v61_v3 = vld [vmem:[#allocation5 + $0x60] sm:$0xff]  ;;  %v60_v4 = vld [vmem:[#allocation5 + $0x58] sm:$0xff] }
   0xe   :  { %v59_v5 = vld [vmem:[#allocation5 + $0x50] sm:$0xff]  ;;  %v58_v6 = vld [vmem:[#allocation5 + $0x48] sm:$0xff]  ;;  %v57_v7 = vld [vmem:[#allocation5 + $0x40] sm:$0xff] }
   0xf   :  { %70 = vmatpush.msra.mxu0 %v63_v1  ;;  %159 = vmatpush.msra.mxu1 %v63_v1  ;;  %v56_v8 = vld [vmem:[#allocation5 + $0x38] sm:$0xff]  ;;  %v55_v9 = vld [vmem:[#allocation5 + $0x30] sm:$0xff]  ;;  %v54_v10 = vld [vmem:[#allocation5 + $0x28] sm:$0xff] }
  0x10   :  { %v53_v11 = vld [vmem:[#allocation5 + $0x20] sm:$0xff]  ;;  %v52_v12 = vld [vmem:[#allocation5 + $0x18] sm:$0xff]  ;;  %v51_v13 = vld [vmem:[#allocation5 + $0x10] sm:$0xff] }
  0x11   :  { %71 = vmatpush.msra.mxu0 %v62_v2  ;;  %160 = vmatpush.msra.mxu1 %v62_v2  ;;  %v50_v14 = vld [vmem:[#allocation5 + $0x8] sm:$0xff]  ;;  %v49_v15 = vld [vmem:[#allocation5] sm:$0xff]  ;;  %v47_v16 = vld [vmem:[#allocation2] sm:$0xff] }
  0x12   :  { %v48_v17 = vld [vmem:[#allocation2 + $0x8] sm:$0xff]  ;;  %v179_v18 = vld [vmem:[%s314_s2] ss:$0 sm:$0xff]  ;;  %s270_s2 = smov [#allocation7]  }
  0x13   :  { %72 = vmatpush.msra.mxu0 %v61_v3  ;;  %161 = vmatpush.msra.mxu1 %v61_v3  ;;  %s140_s24 = sshll.u32 %s270_s2, 4  ;;  %s141_s24 = int_to_ptr.vmem [resolvable:$true] %s140_s24 }
  0x15   :  { %73 = vmatpush.msra.mxu0 %v60_v4  ;;  %162 = vmatpush.msra.mxu1 %v60_v4 }
  0x17   :  { %74 = vmatpush.msra.mxu0 %v59_v5  ;;  %163 = vmatpush.msra.mxu1 %v59_v5 }
  0x19   :  { %75 = vmatpush.msra.mxu0 %v58_v6  ;;  %164 = vmatpush.msra.mxu1 %v58_v6 }
  0x1b   :  { %76 = vmatpush.msra.mxu0 %v57_v7  ;;  %165 = vmatpush.msra.mxu1 %v57_v7 }
  0x1d   :  { %77 = vmatpush.msra.mxu0 %v56_v8  ;;  %166 = vmatpush.msra.mxu1 %v56_v8 }
  0x1f   :  { %78 = vmatpush.msra.mxu0 %v55_v9  ;;  %167 = vmatpush.msra.mxu1 %v55_v9 }
  0x21   :  { %79 = vmatpush.msra.mxu0 %v54_v10  ;;  %168 = vmatpush.msra.mxu1 %v54_v10 }
  0x23   :  { %80 = vmatpush.msra.mxu0 %v53_v11  ;;  %169 = vmatpush.msra.mxu1 %v53_v11 }
  0x25   :  { %81 = vmatpush.msra.mxu0 %v52_v12  ;;  %170 = vmatpush.msra.mxu1 %v52_v12 }
  0x27   :  { %82 = vmatpush.msra.mxu0 %v51_v13  ;;  %171 = vmatpush.msra.mxu1 %v51_v13 }
  0x29   :  { %83 = vmatpush.msra.mxu0 %v50_v14  ;;  %172 = vmatpush.msra.mxu1 %v50_v14 }
  0x2b   :  { %84 = vmatpush.msra.mxu0 %v49_v15  ;;  %173 = vmatpush.msra.mxu1 %v49_v15 }
  0x2c   :  { %85 = vmatmul.f32.vlgmr.msra.gmra.mxu0 %v47_v16  ;;  %88 = vmatmul.f32.vlgmr.msra.gmra.mxu1 %v48_v17 }
  0xa9   :  { %v86_v19 = vpop.f32.mrf.mxu0  ;;  %v89_v20 = vpop.f32.mrf.mxu1 }
  0xaa   :  { %v87_v21 = vadd.f32 %v179_v18, %v86_v19  ;;  %v90_v22 = vadd.f32 %v179_v18, %v89_v20 }
  0xac   :  { %v156_v23 = vmul.f32 -1.702, %v87_v21  ;;  %v157_v24 = vmul.f32 -1.702, %v90_v22 }
  0xae   :  { %v96_v25 = vmul.f32 1.442695, %v156_v23  ;;  %v98_v26 = vmul.f32 1.442695, %v157_v24 }
  0xb0   :  { %180 = vpow2.f32 %v96_v25 }
  0xb1   :  { %182 = vpow2.f32 %v98_v26 }
  0xb6   :  { %v181_v27 = vpop.eup %180 }
  0xb7   :  { %v183_v28 = vpop.eup %182  ;;  %v100_v29 = vadd.f32 1.0, %v181_v27 }
  0xb8   :  { %v101_v30 = vadd.f32 1.0, %v183_v28 }
  0xb9   :  { %184 = vrcp.f32 %v100_v29  ;;  %v113_v36 = vand.u32 2147483648, %v100_v29  ;;  %v111_v39 = vand.u32 2147483647, %v100_v29  ;;  %vm107_vm2 = vweird.f32 %v100_v29 }
  0xba   :  { %186 = vrcp.f32 %v101_v30  ;;  %v128_v40 = vand.u32 2147483648, %v101_v30  ;;  %v126_v42 = vand.u32 2147483647, %v101_v30  ;;  %vm122_vm4 = vweird.f32 %v101_v30 }
  0xbb   :  { %v114_v44 = vor.u32 1.1754944e-38, %v113_v36  ;;  %vm112_vm5 = vcmp.eq.f32.partialorder %v111_v39, 8.507059e+37 }
  0xbc   :  { %v129_v47 = vor.u32 1.1754944e-38, %v128_v40  ;;  %vm127_vm7 = vcmp.eq.f32.partialorder %v126_v42, 8.507059e+37 }
  0xbf   :  { %v185_v31 = vpop.eup %184 }
  0xc0   :  { %v187_v32 = vpop.eup %186  ;;  %v103_v33 = vmul.f32 %v185_v31, %v100_v29  ;;  %vm108_vm0 = vweird.f32 %v185_v31 }
  0xc1   :  { %v118_v34 = vmul.f32 %v187_v32, %v101_v30  ;;  %vm123_vm1 = vweird.f32 %v187_v32  ;;  %vm109_vm3 = vmor %vm107_vm2, %vm108_vm0 }
  0xc2   :  { %v104_v35 = vsub.f32 1.0, %v103_v33  ;;  %vm124_vm6 = vmor %vm122_vm4, %vm123_vm1 }
  0xc3   :  { %v119_v37 = vsub.f32 1.0, %v118_v34 }
  0xc4   :  { %v105_v38 = vmul.f32 %v185_v31, %v104_v35 }
  0xc5   :  { %v120_v41 = vmul.f32 %v187_v32, %v119_v37 }
  0xc6   :  { %v106_v43 = vadd.f32 %v185_v31, %v105_v38 }
  0xc7   :  { %v121_v45 = vadd.f32 %v187_v32, %v120_v41 }
  0xc8   :  { %v110_v46 = vsel %vm109_vm3, %v185_v31, %v106_v43 }
  0xc9   :  { %v115_v48 = vsel %vm112_vm5, %v114_v44, %v110_v46  ;;  %v125_v49 = vsel %vm124_vm6, %v187_v32, %v121_v45 }
  0xca   :  { %v132_v50 = vmul.f32 %v115_v48, %v87_v21  ;;  %v130_v51 = vsel %vm127_vm7, %v129_v47, %v125_v49 }
  0xcb   :  { %v133_v52 = vmul.f32 %v130_v51, %v90_v22 }
  0xcc   :  { %134 = vst [vmem:[#allocation7] sm:$0xff] %v132_v50 }
  0xcd   :  { %135 = vst [vmem:[#allocation7 + $0x8] sm:$0xff] %v133_v52 }
  0xce   :  { %148 = dma.vmem_to_hbm [thread:$0]  %s141_s24, 256, %s143_s27, [#allocation4], %s267_s20, %s267_s20, %s268_s21  }
  0xcf   :  { %264 = dma.done.wait [#allocation4], 256  }
  0xd0   :  { %265 = vsyncadd [#allocation4], 4294967040 }
  0xd1   :  { %153 = vsyncpa [#allocation3], 1 }
  0xd2   :  { %154 = vsyncpa [#allocation6], 1 }
  0xd3   :  { %155 = vsyncpa [#allocation4], 1 }

</bundles_post_ra>
